<compile_context>
chip_gen: v7x
topology: tpu7x:2x2x1
jax: 0.10.0
libtpu: 0.0.40
codegen_flags: <defaults>
</compile_context>

<pallas_src>
import functools

import jax
import jax.numpy as jnp
from jax.experimental import pallas as pl
from jax.experimental.pallas import tpu as pltpu

SIZE = 32          # GCN hidden size
NUM_LAYERS = 2
NUM_GRAPHS = 2
OUT_DIM = 4        # classifier output channels
OUT_PAD = 128      # lane-dense padding of the final output slab / slabB width


# ----------------------------- helpers ---------------------------------------

def _round_up(v, m):
    return -(-v // m) * m


def _round8(n):
    return _round_up(n, 8)


def _pad2(x, rows, cols):
    out = jnp.zeros((rows, cols), x.dtype)
    return out.at[: x.shape[0], : x.shape[1]].set(x)


def _slab_layout(size, num_layers):
    """Static row layout of the packed weight slab (slabA).

    Weights occupy 32-row blocks; each bias gets row 0 of its own 8-row block so
    every static ref slice starts on a sublane-tile boundary.
    """
    wo = {}
    off = 0
    for br in (1, 2):
        for l in range(num_layers):
            wo[f"g{br}_{l}"] = off
            off += size
    for name in ("mw0a", "mw0b", "mw1", "mw2"):
        wo[name] = off
        off += size
    bo = {}
    bias_names = ([f"g{br}_{l}" for br in (1, 2) for l in range(num_layers)]
                  + ["mb0", "mb1", "mb2"])
    for name in bias_names:
        bo[name] = off
        off += 8
    return wo, bo, off            # off is already a multiple of 8


# ----------------------------- Pallas kernel --------------------------------

def _fused_gnn_classifier_kernel(
    x1_ref, t1_ref,                # branch 1: padded node feats (N1p,32), topo slab (8,W1) i32
    x2_ref, t2_ref,                # branch 2
    wA_ref,                        # packed GCN + MLP[0..2] weights/biases, (312,32) f32
    wB_ref,                        # lane-padded MLP[3] weight+bias, (40,128) f32
    out_ref,                       # (g_pad, OUT_PAD) lane-dense output slab
    *, num_layers, residual, g_pad,
):
    size = SIZE
    wo, bo, _ = _slab_layout(size, num_layers)

    def W(name):                                   # (32,32) static aligned slice
        return wA_ref[wo[name]:wo[name] + size, :]

    def B(name):                                   # (1,32) static aligned slice
        return wA_ref[bo[name]:bo[name] + 1, :]

    def gcn_branch(x_ref, t_ref, br):
        np_ = x_ref.shape[0]                       # padded node count (static)
        wp = t_ref.shape[1]                        # topo lane width (static, mult of 128)

        # --- build A = scatter(dst, src) + I entirely in-kernel (no XLA scatter) ---
        src = t_ref[0:1, :]                        # (1, wp) int32, -1 in padded lanes
        dst = t_ref[1:2, :]
        ids = jax.lax.broadcasted_iota(jnp.int32, (np_, wp), 0)
        od = (ids == dst).astype(jnp.float32)      # od[i,e] = [dst_e == i]
        os_ = (ids == src).astype(jnp.float32)     # os[j,e] = [src_e == j]
        a = jnp.dot(od, os_.T, preferred_element_type=jnp.float32)   # (np, np)
        rr = jax.lax.broadcasted_iota(jnp.int32, (np_, np_), 0)
        cc = jax.lax.broadcasted_iota(jnp.int32, (np_, np_), 1)
        a = a + (rr == cc).astype(jnp.float32)     # + self-loops

        deg = jnp.sum(a, axis=1, keepdims=True)    # (np,1), >= 1 thanks to +I
        dinv = jax.lax.rsqrt(deg)

        # --- GCN layers: D^-1/2 (A (D^-1/2 (X W))) + b (+res) -> ReLU ---
        x = x_ref[...]
        for l in range(num_layers):                # static unroll
            prev = x
            xw = jnp.dot(x, W(f"g{br}_{l}"), preferred_element_type=jnp.float32)
            h = dinv * jnp.dot(a, dinv * xw,
                               preferred_element_type=jnp.float32) + B(f"g{br}_{l}")
            if residual:
                h = h + prev                       # residual added before ReLU (torch ref)
            x = jnp.maximum(h, 0.0)
            # dropout (eval mode) = identity

        # --- global mean pool, pooling matrix built in-kernel from batch row ---
        bt = t_ref[2:3, :]                         # (1, wp), -1 for padded nodes
        gids = jax.lax.broadcasted_iota(jnp.int32, (g_pad, wp), 0)
        og = (gids == bt).astype(jnp.float32)      # (g_pad, wp)
        cnt = jnp.sum(og, axis=1, keepdims=True)
        pool = og / jnp.maximum(cnt, 1.0)
        return jnp.dot(pool[:, :np_], x, preferred_element_type=jnp.float32)

    h1 = gcn_branch(x1_ref, t1_ref, 1)             # (g_pad, 32)
    h2 = gcn_branch(x2_ref, t2_ref, 2)             # (g_pad, 32)

    # MLP layer 0 on concat([h1,h2], axis=1) via split weights (no lane concat).
    h = (jnp.dot(h1, W("mw0a"), preferred_element_type=jnp.float32)
         + jnp.dot(h2, W("mw0b"), preferred_element_type=jnp.float32) + B("mb0"))
    h = jnp.maximum(h, 0.0)
    # eval-mode BatchNorm1d (fresh running stats) = identity; dropout = identity
    h = jnp.maximum(jnp.dot(h, W("mw1"), preferred_element_type=jnp.float32)
                    + B("mb1"), 0.0)
    h = jnp.maximum(jnp.dot(h, W("mw2"), preferred_element_type=jnp.float32)
                    + B("mb2"), 0.0)
    out = (jnp.dot(h, wB_ref[0:SIZE, :], preferred_element_type=jnp.float32)
           + wB_ref[SIZE:SIZE + 1, :])
    out_ref[...] = out.astype(out_ref.dtype)       # (g_pad, 128) unmasked lane-dense vst


def _vmem_spec():
    return pl.BlockSpec(memory_space=pltpu.MemorySpace.VMEM)


def fused_forward(x1p, t1, x2p, t2, slabA, slabB, *, num_layers, residual, g_pad):
    kernel = functools.partial(_fused_gnn_classifier_kernel,
                               num_layers=num_layers, residual=residual, g_pad=g_pad)
    return pl.pallas_call(
        kernel,
        out_shape=jax.ShapeDtypeStruct((g_pad, OUT_PAD), jnp.float32),
        in_specs=[_vmem_spec() for _ in range(6)],
        out_specs=_vmem_spec(),
    )(x1p, t1, x2p, t2, slabA, slabB)


# ----------------------------- weight packing (done once) --------------------

def pack_params(params, size=SIZE, num_layers=NUM_LAYERS):
    wo, bo, total = _slab_layout(size, num_layers)
    slabA = jnp.zeros((total, size), jnp.float32)
    for br in (1, 2):
        for l in range(num_layers):
            slabA = slabA.at[wo[f"g{br}_{l}"]:wo[f"g{br}_{l}"] + size, :].set(
                params[f"gnn{br}_w"][l])
            slabA = slabA.at[bo[f"g{br}_{l}"], :].set(params[f"gnn{br}_b"][l])
    mw0 = params["mlp_w"][0]                                   # (64, 32)
    slabA = slabA.at[wo["mw0a"]:wo["mw0a"] + size, :].set(mw0[:size])
    slabA = slabA.at[wo["mw0b"]:wo["mw0b"] + size, :].set(mw0[size:])
    slabA = slabA.at[wo["mw1"]:wo["mw1"] + size, :].set(params["mlp_w"][1])
    slabA = slabA.at[wo["mw2"]:wo["mw2"] + size, :].set(params["mlp_w"][2])
    slabA = slabA.at[bo["mb0"], :].set(params["mlp_b"][0])
    slabA = slabA.at[bo["mb1"], :].set(params["mlp_b"][1])
    slabA = slabA.at[bo["mb2"], :].set(params["mlp_b"][2])

    slabB = jnp.zeros((_round8(size + 1), OUT_PAD), jnp.float32)
    slabB = slabB.at[:size, :OUT_DIM].set(params["mlp_w"][3])   # (32, 4) lane-padded
    slabB = slabB.at[size, :OUT_DIM].set(params["mlp_b"][3])
    return slabA, slabB


# ----------------------------- jitted forward wrapper -------------------------

def _build_topo(edge_index, batch, width):
    """int32 topology slab (8, width): row0=src, row1=dst, row2=batch, pad = -1."""
    src = edge_index[0].astype(jnp.int32)
    dst = edge_index[1].astype(jnp.int32)
    t = jnp.full((8, width), -1, jnp.int32)
    t = t.at[0, :src.shape[0]].set(src)
    t = t.at[1, :dst.shape[0]].set(dst)
    t = t.at[2, :batch.shape[0]].set(batch.astype(jnp.int32))
    return t


@functools.partial(jax.jit, static_argnames=("num_graphs", "num_layers", "residual"))
def gnn_classifier_forward(slabA, slabB, x1, edge_index1, batch1,
                           x2, edge_index2, batch2,
                           num_graphs=NUM_GRAPHS, num_layers=NUM_LAYERS, residual=True):
    n1, n2 = x1.shape[0], x2.shape[0]
    n1p, n2p = _round8(n1), _round8(n2)
    g_pad = max(8, _round8(num_graphs))                       # fixes hard-coded G_PAD bug
    w1 = _round_up(max(edge_index1.shape[1], n1p), 128)
    w2 = _round_up(max(edge_index2.shape[1], n2p), 128)

    x1p = _pad2(x1.astype(jnp.float32), n1p, SIZE)
    x2p = _pad2(x2.astype(jnp.float32), n2p, SIZE)
    t1 = _build_topo(edge_index1, batch1, w1)
    t2 = _build_topo(edge_index2, batch2, w2)

    out = fused_forward(x1p, t1, x2p, t2, slabA, slabB,
                        num_layers=num_layers, residual=residual, g_pad=g_pad)
    return out[:num_graphs, :OUT_DIM]


# ----------------------------- init + pure-JAX reference ----------------------

def init_params(key, size, num_layers):
    params = {}
    keys = iter(jax.random.split(key, 64))

    def kaiming(shape, fan_in):
        bound = (6.0 / fan_in) ** 0.5
        return jax.random.uniform(next(keys), shape, jnp.float32, -bound, bound)

    for branch in (1, 2):
        ws, bs = [], []
        for _ in range(num_layers):
            ws.append(kaiming((size, size), size))            # GCNConv weight (in, out)
            bs.append(jnp.zeros((size,), jnp.float32))
        params[f"gnn{branch}_w"] = ws
        params[f"gnn{branch}_b"] = bs

    dims = [2 * size, size, size, size, OUT_DIM]              # PyG MLP(64,32,..,4, L=4)
    mlp_w, mlp_b = [], []
    for i in range(4):
        mlp_w.append(kaiming((dims[i], dims[i + 1]), dims[i]))
        mlp_b.append(jnp.zeros((dims[i + 1],), jnp.float32))
    params["mlp_w"] = mlp_w
    params["mlp_b"] = mlp_b
    return params


def _gcn_norm_dense_ref(edge_index, num_nodes):
    src, dst = edge_index[0], edge_index[1]
    A = jnp.zeros((num_nodes, num_nodes), jnp.float32).at[dst, src].add(1.0)
    A = A + jnp.eye(num_nodes, dtype=jnp.float32)
    deg = A.sum(axis=1)
    dinv = jax.lax.rsqrt(deg)
    return dinv[:, None] * A * dinv[None, :]


def _mean_pool_matrix_ref(batch, num_graphs):
    onehot = (batch[None, :] == jnp.arange(num_graphs)[:, None]).astype(jnp.float32)
    counts = onehot.sum(axis=1, keepdims=True)
    return onehot / jnp.maximum(counts, 1.0)


def reference_forward(params, x1, edge_index1, batch1, x2, edge_index2, batch2,
                      num_graphs=NUM_GRAPHS, residual=True):
    def branch(x, edge_index, batch, ws, bs):
        A = _gcn_norm_dense_ref(edge_index, x.shape[0])
        for w, b in zip(ws, bs):
            prev = x
            h = A @ (x @ w) + b
            if residual:
                h = h + prev
            x = jax.nn.relu(h)
        return _mean_pool_matrix_ref(batch, num_graphs) @ x

    h1 = branch(x1, edge_index1, batch1, params["gnn1_w"], params["gnn1_b"])
    h2 = branch(x2, edge_index2, batch2, params["gnn2_w"], params["gnn2_b"])
    h = jnp.concatenate([h1, h2], axis=1)
    for i in range(4):
        h = h @ params["mlp_w"][i] + params["mlp_b"][i]
        if i < 3:
            h = jax.nn.relu(h)
    return h


# ----------------------------- main ------------------------------------------

if __name__ == "__main__":
    root = jax.random.PRNGKey(0)
    k_params, k_x1, k_x2 = jax.random.split(root, 3)
    params = init_params(k_params, SIZE, NUM_LAYERS)
    slabA, slabB = pack_params(params)            # packed once, outside the forward

    def ring_graph(offset, n):
        src = jnp.arange(n, dtype=jnp.int32) + offset
        dst = (jnp.arange(n, dtype=jnp.int32) + 1) % n + offset
        return jnp.stack([jnp.concatenate([src, dst]),
                          jnp.concatenate([dst, src])])       # undirected

    # branch 1: two ring graphs of 8 nodes each (16 nodes, 32 edges)
    n1a, n1b = 8, 8
    edge_index1 = jnp.concatenate([ring_graph(0, n1a), ring_graph(n1a, n1b)], axis=1)
    batch1 = jnp.concatenate([jnp.zeros(n1a, jnp.int32), jnp.ones(n1b, jnp.int32)])
    # branch 2: two ring graphs of 6 nodes each (12 nodes, 24 edges)
    n2a, n2b = 6, 6
    edge_index2 = jnp.concatenate([ring_graph(0, n2a), ring_graph(n2a, n2b)], axis=1)
    batch2 = jnp.concatenate([jnp.zeros(n2a, jnp.int32), jnp.ones(n2b, jnp.int32)])

    x1 = jax.random.normal(k_x1, (n1a + n1b, SIZE), jnp.float32)
    x2 = jax.random.normal(k_x2, (n2a + n2b, SIZE), jnp.float32)

    out = gnn_classifier_forward(slabA, slabB, x1, edge_index1, batch1,
                                 x2, edge_index2, batch2)
    out = jax.block_until_ready(out)

    ref = reference_forward(params, x1, edge_index1, batch1,
                            x2, edge_index2, batch2)
    ref = jax.block_until_ready(ref)

    assert out.shape == (NUM_GRAPHS, OUT_DIM)
    assert bool(jnp.all(jnp.isfinite(out)))
    assert bool(jnp.allclose(out, ref, atol=1e-3, rtol=1e-3)), (out, ref)
    print("KERNEL_OK")
</pallas_src>

<mosaic_0001>
module attributes {stable_mosaic.version = 11 : i64} {
  func.func @_fused_gnn_classifier_kernel(%arg0: memref<16x32xf32, #tpu.memory_space<vmem>>, %arg1: memref<8x128xi32, #tpu.memory_space<vmem>>, %arg2: memref<16x32xf32, #tpu.memory_space<vmem>>, %arg3: memref<8x128xi32, #tpu.memory_space<vmem>>, %arg4: memref<312x32xf32, #tpu.memory_space<vmem>>, %arg5: memref<40x128xf32, #tpu.memory_space<vmem>>, %arg6: memref<8x128xf32, #tpu.memory_space<vmem>>) attributes {dimension_semantics = [], scalar_prefetch = 0 : i64, scratch_operands = 0 : i64, tpu.core_type = #tpu.core_type<tc>} {
    %c0 = arith.constant 0 : index
    %c0_0 = arith.constant 0 : index
    %0 = vector.load %arg1[%c0, %c0_0] : memref<8x128xi32, #tpu.memory_space<vmem>>, vector<1x128xi32>
    %c1 = arith.constant 1 : index
    %c0_1 = arith.constant 0 : index
    %1 = vector.load %arg1[%c1, %c0_1] : memref<8x128xi32, #tpu.memory_space<vmem>>, vector<1x128xi32>
    %2 = tpu.iota {dimensions = array<i32: 0>} : vector<16x128xi32>
    %3 = vector.broadcast %1 : vector<1x128xi32> to vector<16x128xi32>
    %4 = arith.cmpi eq, %2, %3 : vector<16x128xi32>
    %5 = arith.extui %4 : vector<16x128xi1> to vector<16x128xi32>
    %6 = arith.sitofp %5 : vector<16x128xi32> to vector<16x128xf32>
    %7 = vector.broadcast %0 : vector<1x128xi32> to vector<16x128xi32>
    %8 = arith.cmpi eq, %2, %7 : vector<16x128xi32>
    %9 = arith.extui %8 : vector<16x128xi1> to vector<16x128xi32>
    %10 = arith.sitofp %9 : vector<16x128xi32> to vector<16x128xf32>
    %11 = tpu.transpose %10, [1, 0] : vector<16x128xf32> -> vector<128x16xf32>
    %cst = arith.constant dense<0.000000e+00> : vector<16x16xf32>
    %12 = tpu.matmul %6, %11, %cst {dimension_numbers = #tpu.dot_dimension_numbers<[1], [0], [0], [1], [0, 0, 1, 1], [], []>} : vector<16x128xf32>, vector<128x16xf32>, vector<16x16xf32> -> vector<16x16xf32>
    %13 = tpu.iota {dimensions = array<i32: 0>} : vector<16x16xi32>
    %14 = tpu.iota {dimensions = array<i32: 1>} : vector<16x16xi32>
    %15 = arith.cmpi eq, %13, %14 : vector<16x16xi32>
    %16 = arith.extui %15 : vector<16x16xi1> to vector<16x16xi32>
    %17 = arith.sitofp %16 : vector<16x16xi32> to vector<16x16xf32>
    %18 = arith.addf %12, %17 : vector<16x16xf32>
    %cst_2 = arith.constant dense<0.000000e+00> : vector<16xf32>
    %19 = vector.multi_reduction <add>, %18, %cst_2 [1] : vector<16x16xf32> to vector<16xf32>
    %20 = vector.shape_cast %19 : vector<16xf32> to vector<16x1xf32>
    %21 = math.rsqrt %20 : vector<16x1xf32>
    %c0_3 = arith.constant 0 : index
    %c0_4 = arith.constant 0 : index
    %22 = vector.load %arg0[%c0_3, %c0_4] : memref<16x32xf32, #tpu.memory_space<vmem>>, vector<16x32xf32>
    %c0_5 = arith.constant 0 : index
    %c0_6 = arith.constant 0 : index
    %23 = vector.load %arg4[%c0_5, %c0_6] : memref<312x32xf32, #tpu.memory_space<vmem>>, vector<32x32xf32>
    %cst_7 = arith.constant dense<0.000000e+00> : vector<16x32xf32>
    %24 = tpu.matmul %22, %23, %cst_7 {dimension_numbers = #tpu.dot_dimension_numbers<[1], [0], [0], [1], [0, 0, 1, 1], [], []>} : vector<16x32xf32>, vector<32x32xf32>, vector<16x32xf32> -> vector<16x32xf32>
    %25 = vector.broadcast %21 : vector<16x1xf32> to vector<16x32xf32>
    %26 = arith.mulf %25, %24 : vector<16x32xf32>
    %cst_8 = arith.constant dense<0.000000e+00> : vector<16x32xf32>
    %27 = tpu.matmul %18, %26, %cst_8 {dimension_numbers = #tpu.dot_dimension_numbers<[1], [0], [0], [1], [0, 0, 1, 1], [], []>} : vector<16x16xf32>, vector<16x32xf32>, vector<16x32xf32> -> vector<16x32xf32>
    %28 = vector.broadcast %21 : vector<16x1xf32> to vector<16x32xf32>
    %29 = arith.mulf %28, %27 : vector<16x32xf32>
    %c256 = arith.constant 256 : index
    %c0_9 = arith.constant 0 : index
    %30 = vector.load %arg4[%c256, %c0_9] : memref<312x32xf32, #tpu.memory_space<vmem>>, vector<1x32xf32>
    %31 = vector.broadcast %30 : vector<1x32xf32> to vector<16x32xf32>
    %32 = arith.addf %29, %31 : vector<16x32xf32>
    %33 = arith.addf %32, %22 : vector<16x32xf32>
    %cst_10 = arith.constant 0.000000e+00 : f32
    %34 = vector.broadcast %cst_10 : f32 to vector<16x32xf32>
    %35 = arith.maximumf %33, %34 : vector<16x32xf32>
    %c32 = arith.constant 32 : index
    %c0_11 = arith.constant 0 : index
    %36 = vector.load %arg4[%c32, %c0_11] : memref<312x32xf32, #tpu.memory_space<vmem>>, vector<32x32xf32>
    %cst_12 = arith.constant dense<0.000000e+00> : vector<16x32xf32>
    %37 = tpu.matmul %35, %36, %cst_12 {dimension_numbers = #tpu.dot_dimension_numbers<[1], [0], [0], [1], [0, 0, 1, 1], [], []>} : vector<16x32xf32>, vector<32x32xf32>, vector<16x32xf32> -> vector<16x32xf32>
    %38 = vector.broadcast %21 : vector<16x1xf32> to vector<16x32xf32>
    %39 = arith.mulf %38, %37 : vector<16x32xf32>
    %cst_13 = arith.constant dense<0.000000e+00> : vector<16x32xf32>
    %40 = tpu.matmul %18, %39, %cst_13 {dimension_numbers = #tpu.dot_dimension_numbers<[1], [0], [0], [1], [0, 0, 1, 1], [], []>} : vector<16x16xf32>, vector<16x32xf32>, vector<16x32xf32> -> vector<16x32xf32>
    %41 = vector.broadcast %21 : vector<16x1xf32> to vector<16x32xf32>
    %42 = arith.mulf %41, %40 : vector<16x32xf32>
    %c264 = arith.constant 264 : index
    %c0_14 = arith.constant 0 : index
    %43 = vector.load %arg4[%c264, %c0_14] : memref<312x32xf32, #tpu.memory_space<vmem>>, vector<1x32xf32>
    %44 = vector.broadcast %43 : vector<1x32xf32> to vector<16x32xf32>
    %45 = arith.addf %42, %44 : vector<16x32xf32>
    %46 = arith.addf %45, %35 : vector<16x32xf32>
    %cst_15 = arith.constant 0.000000e+00 : f32
    %47 = vector.broadcast %cst_15 : f32 to vector<16x32xf32>
    %48 = arith.maximumf %46, %47 : vector<16x32xf32>
    %c2 = arith.constant 2 : index
    %c0_16 = arith.constant 0 : index
    %49 = vector.load %arg1[%c2, %c0_16] : memref<8x128xi32, #tpu.memory_space<vmem>>, vector<1x128xi32>
    %50 = tpu.iota {dimensions = array<i32: 0>} : vector<8x128xi32>
    %51 = vector.broadcast %49 : vector<1x128xi32> to vector<8x128xi32>
    %52 = arith.cmpi eq, %50, %51 : vector<8x128xi32>
    %53 = arith.extui %52 : vector<8x128xi1> to vector<8x128xi32>
    %54 = arith.sitofp %53 : vector<8x128xi32> to vector<8x128xf32>
    %cst_17 = arith.constant dense<0.000000e+00> : vector<8xf32>
    %55 = vector.multi_reduction <add>, %54, %cst_17 [1] : vector<8x128xf32> to vector<8xf32>
    %56 = vector.shape_cast %55 : vector<8xf32> to vector<8x1xf32>
    %cst_18 = arith.constant 1.000000e+00 : f32
    %57 = vector.broadcast %cst_18 : f32 to vector<8x1xf32>
    %58 = arith.maximumf %56, %57 : vector<8x1xf32>
    %59 = vector.broadcast %58 : vector<8x1xf32> to vector<8x128xf32>
    %60 = arith.divf %54, %59 : vector<8x128xf32>
    %61 = vector.extract_strided_slice %60 {offsets = [0, 0], sizes = [8, 16], strides = [1, 1]} : vector<8x128xf32> to vector<8x16xf32>
    %cst_19 = arith.constant dense<0.000000e+00> : vector<8x32xf32>
    %62 = tpu.matmul %61, %48, %cst_19 {dimension_numbers = #tpu.dot_dimension_numbers<[1], [0], [0], [1], [0, 0, 1, 1], [], []>} : vector<8x16xf32>, vector<16x32xf32>, vector<8x32xf32> -> vector<8x32xf32>
    %c0_20 = arith.constant 0 : index
    %c0_21 = arith.constant 0 : index
    %63 = vector.load %arg3[%c0_20, %c0_21] : memref<8x128xi32, #tpu.memory_space<vmem>>, vector<1x128xi32>
    %c1_22 = arith.constant 1 : index
    %c0_23 = arith.constant 0 : index
    %64 = vector.load %arg3[%c1_22, %c0_23] : memref<8x128xi32, #tpu.memory_space<vmem>>, vector<1x128xi32>
    %65 = tpu.iota {dimensions = array<i32: 0>} : vector<16x128xi32>
    %66 = vector.broadcast %64 : vector<1x128xi32> to vector<16x128xi32>
    %67 = arith.cmpi eq, %65, %66 : vector<16x128xi32>
    %68 = arith.extui %67 : vector<16x128xi1> to vector<16x128xi32>
    %69 = arith.sitofp %68 : vector<16x128xi32> to vector<16x128xf32>
    %70 = vector.broadcast %63 : vector<1x128xi32> to vector<16x128xi32>
    %71 = arith.cmpi eq, %65, %70 : vector<16x128xi32>
    %72 = arith.extui %71 : vector<16x128xi1> to vector<16x128xi32>
    %73 = arith.sitofp %72 : vector<16x128xi32> to vector<16x128xf32>
    %74 = tpu.transpose %73, [1, 0] : vector<16x128xf32> -> vector<128x16xf32>
    %cst_24 = arith.constant dense<0.000000e+00> : vector<16x16xf32>
    %75 = tpu.matmul %69, %74, %cst_24 {dimension_numbers = #tpu.dot_dimension_numbers<[1], [0], [0], [1], [0, 0, 1, 1], [], []>} : vector<16x128xf32>, vector<128x16xf32>, vector<16x16xf32> -> vector<16x16xf32>
    %76 = tpu.iota {dimensions = array<i32: 0>} : vector<16x16xi32>
    %77 = tpu.iota {dimensions = array<i32: 1>} : vector<16x16xi32>
    %78 = arith.cmpi eq, %76, %77 : vector<16x16xi32>
    %79 = arith.extui %78 : vector<16x16xi1> to vector<16x16xi32>
    %80 = arith.sitofp %79 : vector<16x16xi32> to vector<16x16xf32>
    %81 = arith.addf %75, %80 : vector<16x16xf32>
    %cst_25 = arith.constant dense<0.000000e+00> : vector<16xf32>
    %82 = vector.multi_reduction <add>, %81, %cst_25 [1] : vector<16x16xf32> to vector<16xf32>
    %83 = vector.shape_cast %82 : vector<16xf32> to vector<16x1xf32>
    %84 = math.rsqrt %83 : vector<16x1xf32>
    %c0_26 = arith.constant 0 : index
    %c0_27 = arith.constant 0 : index
    %85 = vector.load %arg2[%c0_26, %c0_27] : memref<16x32xf32, #tpu.memory_space<vmem>>, vector<16x32xf32>
    %c64 = arith.constant 64 : index
    %c0_28 = arith.constant 0 : index
    %86 = vector.load %arg4[%c64, %c0_28] : memref<312x32xf32, #tpu.memory_space<vmem>>, vector<32x32xf32>
    %cst_29 = arith.constant dense<0.000000e+00> : vector<16x32xf32>
    %87 = tpu.matmul %85, %86, %cst_29 {dimension_numbers = #tpu.dot_dimension_numbers<[1], [0], [0], [1], [0, 0, 1, 1], [], []>} : vector<16x32xf32>, vector<32x32xf32>, vector<16x32xf32> -> vector<16x32xf32>
    %88 = vector.broadcast %84 : vector<16x1xf32> to vector<16x32xf32>
    %89 = arith.mulf %88, %87 : vector<16x32xf32>
    %cst_30 = arith.constant dense<0.000000e+00> : vector<16x32xf32>
    %90 = tpu.matmul %81, %89, %cst_30 {dimension_numbers = #tpu.dot_dimension_numbers<[1], [0], [0], [1], [0, 0, 1, 1], [], []>} : vector<16x16xf32>, vector<16x32xf32>, vector<16x32xf32> -> vector<16x32xf32>
    %91 = vector.broadcast %84 : vector<16x1xf32> to vector<16x32xf32>
    %92 = arith.mulf %91, %90 : vector<16x32xf32>
    %c272 = arith.constant 272 : index
    %c0_31 = arith.constant 0 : index
    %93 = vector.load %arg4[%c272, %c0_31] : memref<312x32xf32, #tpu.memory_space<vmem>>, vector<1x32xf32>
    %94 = vector.broadcast %93 : vector<1x32xf32> to vector<16x32xf32>
    %95 = arith.addf %92, %94 : vector<16x32xf32>
    %96 = arith.addf %95, %85 : vector<16x32xf32>
    %cst_32 = arith.constant 0.000000e+00 : f32
    %97 = vector.broadcast %cst_32 : f32 to vector<16x32xf32>
    %98 = arith.maximumf %96, %97 : vector<16x32xf32>
    %c96 = arith.constant 96 : index
    %c0_33 = arith.constant 0 : index
    %99 = vector.load %arg4[%c96, %c0_33] : memref<312x32xf32, #tpu.memory_space<vmem>>, vector<32x32xf32>
    %cst_34 = arith.constant dense<0.000000e+00> : vector<16x32xf32>
    %100 = tpu.matmul %98, %99, %cst_34 {dimension_numbers = #tpu.dot_dimension_numbers<[1], [0], [0], [1], [0, 0, 1, 1], [], []>} : vector<16x32xf32>, vector<32x32xf32>, vector<16x32xf32> -> vector<16x32xf32>
    %101 = vector.broadcast %84 : vector<16x1xf32> to vector<16x32xf32>
    %102 = arith.mulf %101, %100 : vector<16x32xf32>
    %cst_35 = arith.constant dense<0.000000e+00> : vector<16x32xf32>
    %103 = tpu.matmul %81, %102, %cst_35 {dimension_numbers = #tpu.dot_dimension_numbers<[1], [0], [0], [1], [0, 0, 1, 1], [], []>} : vector<16x16xf32>, vector<16x32xf32>, vector<16x32xf32> -> vector<16x32xf32>
    %104 = vector.broadcast %84 : vector<16x1xf32> to vector<16x32xf32>
    %105 = arith.mulf %104, %103 : vector<16x32xf32>
    %c280 = arith.constant 280 : index
    %c0_36 = arith.constant 0 : index
    %106 = vector.load %arg4[%c280, %c0_36] : memref<312x32xf32, #tpu.memory_space<vmem>>, vector<1x32xf32>
    %107 = vector.broadcast %106 : vector<1x32xf32> to vector<16x32xf32>
    %108 = arith.addf %105, %107 : vector<16x32xf32>
    %109 = arith.addf %108, %98 : vector<16x32xf32>
    %cst_37 = arith.constant 0.000000e+00 : f32
    %110 = vector.broadcast %cst_37 : f32 to vector<16x32xf32>
    %111 = arith.maximumf %109, %110 : vector<16x32xf32>
    %c2_38 = arith.constant 2 : index
    %c0_39 = arith.constant 0 : index
    %112 = vector.load %arg3[%c2_38, %c0_39] : memref<8x128xi32, #tpu.memory_space<vmem>>, vector<1x128xi32>
    %113 = tpu.iota {dimensions = array<i32: 0>} : vector<8x128xi32>
    %114 = vector.broadcast %112 : vector<1x128xi32> to vector<8x128xi32>
    %115 = arith.cmpi eq, %113, %114 : vector<8x128xi32>
    %116 = arith.extui %115 : vector<8x128xi1> to vector<8x128xi32>
    %117 = arith.sitofp %116 : vector<8x128xi32> to vector<8x128xf32>
    %cst_40 = arith.constant dense<0.000000e+00> : vector<8xf32>
    %118 = vector.multi_reduction <add>, %117, %cst_40 [1] : vector<8x128xf32> to vector<8xf32>
    %119 = vector.shape_cast %118 : vector<8xf32> to vector<8x1xf32>
    %cst_41 = arith.constant 1.000000e+00 : f32
    %120 = vector.broadcast %cst_41 : f32 to vector<8x1xf32>
    %121 = arith.maximumf %119, %120 : vector<8x1xf32>
    %122 = vector.broadcast %121 : vector<8x1xf32> to vector<8x128xf32>
    %123 = arith.divf %117, %122 : vector<8x128xf32>
    %124 = vector.extract_strided_slice %123 {offsets = [0, 0], sizes = [8, 16], strides = [1, 1]} : vector<8x128xf32> to vector<8x16xf32>
    %cst_42 = arith.constant dense<0.000000e+00> : vector<8x32xf32>
    %125 = tpu.matmul %124, %111, %cst_42 {dimension_numbers = #tpu.dot_dimension_numbers<[1], [0], [0], [1], [0, 0, 1, 1], [], []>} : vector<8x16xf32>, vector<16x32xf32>, vector<8x32xf32> -> vector<8x32xf32>
    %c128 = arith.constant 128 : index
    %c0_43 = arith.constant 0 : index
    %126 = vector.load %arg4[%c128, %c0_43] : memref<312x32xf32, #tpu.memory_space<vmem>>, vector<32x32xf32>
    %cst_44 = arith.constant dense<0.000000e+00> : vector<8x32xf32>
    %127 = tpu.matmul %62, %126, %cst_44 {dimension_numbers = #tpu.dot_dimension_numbers<[1], [0], [0], [1], [0, 0, 1, 1], [], []>} : vector<8x32xf32>, vector<32x32xf32>, vector<8x32xf32> -> vector<8x32xf32>
    %c160 = arith.constant 160 : index
    %c0_45 = arith.constant 0 : index
    %128 = vector.load %arg4[%c160, %c0_45] : memref<312x32xf32, #tpu.memory_space<vmem>>, vector<32x32xf32>
    %cst_46 = arith.constant dense<0.000000e+00> : vector<8x32xf32>
    %129 = tpu.matmul %125, %128, %cst_46 {dimension_numbers = #tpu.dot_dimension_numbers<[1], [0], [0], [1], [0, 0, 1, 1], [], []>} : vector<8x32xf32>, vector<32x32xf32>, vector<8x32xf32> -> vector<8x32xf32>
    %130 = arith.addf %127, %129 : vector<8x32xf32>
    %c288 = arith.constant 288 : index
    %c0_47 = arith.constant 0 : index
    %131 = vector.load %arg4[%c288, %c0_47] : memref<312x32xf32, #tpu.memory_space<vmem>>, vector<1x32xf32>
    %132 = vector.broadcast %131 : vector<1x32xf32> to vector<8x32xf32>
    %133 = arith.addf %130, %132 : vector<8x32xf32>
    %cst_48 = arith.constant 0.000000e+00 : f32
    %134 = vector.broadcast %cst_48 : f32 to vector<8x32xf32>
    %135 = arith.maximumf %133, %134 : vector<8x32xf32>
    %c192 = arith.constant 192 : index
    %c0_49 = arith.constant 0 : index
    %136 = vector.load %arg4[%c192, %c0_49] : memref<312x32xf32, #tpu.memory_space<vmem>>, vector<32x32xf32>
    %cst_50 = arith.constant dense<0.000000e+00> : vector<8x32xf32>
    %137 = tpu.matmul %135, %136, %cst_50 {dimension_numbers = #tpu.dot_dimension_numbers<[1], [0], [0], [1], [0, 0, 1, 1], [], []>} : vector<8x32xf32>, vector<32x32xf32>, vector<8x32xf32> -> vector<8x32xf32>
    %c296 = arith.constant 296 : index
    %c0_51 = arith.constant 0 : index
    %138 = vector.load %arg4[%c296, %c0_51] : memref<312x32xf32, #tpu.memory_space<vmem>>, vector<1x32xf32>
    %139 = vector.broadcast %138 : vector<1x32xf32> to vector<8x32xf32>
    %140 = arith.addf %137, %139 : vector<8x32xf32>
    %cst_52 = arith.constant 0.000000e+00 : f32
    %141 = vector.broadcast %cst_52 : f32 to vector<8x32xf32>
    %142 = arith.maximumf %140, %141 : vector<8x32xf32>
    %c224 = arith.constant 224 : index
    %c0_53 = arith.constant 0 : index
    %143 = vector.load %arg4[%c224, %c0_53] : memref<312x32xf32, #tpu.memory_space<vmem>>, vector<32x32xf32>
    %cst_54 = arith.constant dense<0.000000e+00> : vector<8x32xf32>
    %144 = tpu.matmul %142, %143, %cst_54 {dimension_numbers = #tpu.dot_dimension_numbers<[1], [0], [0], [1], [0, 0, 1, 1], [], []>} : vector<8x32xf32>, vector<32x32xf32>, vector<8x32xf32> -> vector<8x32xf32>
    %c304 = arith.constant 304 : index
    %c0_55 = arith.constant 0 : index
    %145 = vector.load %arg4[%c304, %c0_55] : memref<312x32xf32, #tpu.memory_space<vmem>>, vector<1x32xf32>
    %146 = vector.broadcast %145 : vector<1x32xf32> to vector<8x32xf32>
    %147 = arith.addf %144, %146 : vector<8x32xf32>
    %cst_56 = arith.constant 0.000000e+00 : f32
    %148 = vector.broadcast %cst_56 : f32 to vector<8x32xf32>
    %149 = arith.maximumf %147, %148 : vector<8x32xf32>
    %c0_57 = arith.constant 0 : index
    %c0_58 = arith.constant 0 : index
    %150 = vector.load %arg5[%c0_57, %c0_58] : memref<40x128xf32, #tpu.memory_space<vmem>>, vector<32x128xf32>
    %cst_59 = arith.constant dense<0.000000e+00> : vector<8x128xf32>
    %151 = tpu.matmul %149, %150, %cst_59 {dimension_numbers = #tpu.dot_dimension_numbers<[1], [0], [0], [1], [0, 0, 1, 1], [], []>} : vector<8x32xf32>, vector<32x128xf32>, vector<8x128xf32> -> vector<8x128xf32>
    %c32_60 = arith.constant 32 : index
    %c0_61 = arith.constant 0 : index
    %152 = vector.load %arg5[%c32_60, %c0_61] : memref<40x128xf32, #tpu.memory_space<vmem>>, vector<1x128xf32>
    %153 = vector.broadcast %152 : vector<1x128xf32> to vector<8x128xf32>
    %154 = arith.addf %151, %153 : vector<8x128xf32>
    %c0_62 = arith.constant 0 : index
    %c0_63 = arith.constant 0 : index
    %155 = vector.load %arg6[%c0_62, %c0_63] : memref<8x128xf32, #tpu.memory_space<vmem>>, vector<8x128xf32>
    tpu.vector_store %arg6[%c0_62, %c0_63], %154 {strides = array<i32>} : memref<8x128xf32, #tpu.memory_space<vmem>>, vector<8x128xf32>,
    return
  }
}

</mosaic_0001>

<bundles_post_ra>
// kernel: gnn_classifier_forward.1
= control target key start
LH: loop header
LB: loop body
LE: loop exit
PB: predicated region body
PF: predicated region fallthrough
CT: control target
= control target key end

     0   :  { %v25_v0 = vlaneseq  ;;  %vm146_vm0 = vcmask 261120   ;;  %v1948_v12 = vmov 1.0   ;;  %v1949_v13 = vmov 1.0|1.0   ;;  %s2284_s1 = inlined_call_operand.vmem [shape: s32[8,128], index: 1, kind: input, shape index: {}]   ;;  %s2285_s4 = inlined_call_operand.vmem [shape: f32[312,32], index: 4, kind: input, shape index: {}]   ;;  %s2286_s0 = inlined_call_operand.vmem [shape: f32[16,32], index: 0, kind: input, shape index: {}]   ;;  %s2287_s3 = inlined_call_operand.vmem [shape: s32[8,128], index: 3, kind: input, shape index: {}]   ;;  %s2288_s2 = inlined_call_operand.vmem [shape: f32[16,32], index: 2, kind: input, shape index: {}]   ;;  %s2289_s5 = inlined_call_operand.vmem [shape: f32[40,128], index: 5, kind: input, shape index: {}]   ;;  %s2290_s6 = inlined_call_operand.vmem [shape: f32[8,128], index: 6, kind: output, shape index: {}]  }
   0x1   :  { %v1551_v1 = vld [vmem:[%s2284_s1] ss:$0 sm:$0xff]  ;;  %v1548_v2 = vld [vmem:[%s2284_s1 + $0x1] ss:$0 sm:$0xff]  ;;  %v143_v5 = vld [vmem:[%s2285_s4 + $0x8] sm:$0xff]  ;;  %v1950_v16 = vmov 0.0  }
   0x2   :  { %v142_v3 = vld [vmem:[%s2285_s4] sm:$0xff]  ;;  %v1997_v4 = vshrl.u32 %v25_v0, 7  ;;  %v144_v6 = vld [vmem:[%s2285_s4 + $0x10] sm:$0xff]  ;;  %v145_v7 = vld [vmem:[%s2285_s4 + $0x18] sm:$0xff]  ;;  %v49_v15 = vand.u32 127, %v25_v0  ;;  %vm131_vm8 = vcmask 130048  }
   0x3   :  { %v1843_v8 = vpack.c.bf16 %v143_v5, %v142_v3  ;;  %v1847_v9 = vpack.c.bf16 %v145_v7, %v144_v6  ;;  %v2011_v10 = vld [vmem:[%s2286_s0] sm:$0xff]  ;;  %v141_v14 = vld [vmem:[%s2286_s0 + $0x8] sm:$0xff]  ;;  %v326_v37 = vld [vmem:[%s2285_s4 + $0x30] sm:$0xff]  ;;  %v1951_v60 = vmov 0.0|0.0   ;;  %vm1952_vm15 = vmmov 0  }
   0x4   :  { %v2014_v11 = vadd.s32 8, %v1997_v4  ;;  %vm42_vm1 = vcmp.eq.s32.totalorder %v1997_v4, %v1551_v1  ;;  %vm32_vm2 = vcmp.eq.s32.totalorder %v1997_v4, %v1548_v2  ;;  %1699 = vmatprep.mubr.msk.f32.mxu1 %vm146_vm0, %v2011_v10  ;;  %vm50_vm6 = vcmp.eq.s32.totalorder %v1997_v4, %v49_v15  ;;  %v324_v34 = vld [vmem:[%s2285_s4 + $0x20] sm:$0xff]  ;;  %v325_v35 = vld [vmem:[%s2285_s4 + $0x28] sm:$0xff]  ;;  %v327_v38 = vld [vmem:[%s2285_s4 + $0x38] sm:$0xff] }
   0x5   :  { %1688 = vmatprep.mubr.msk.f32.mxu0 %vm32_vm2, %v1948_v12  ;;  %1844 = vmatprep.subr.bf16.mxu1 %v1843_v8  ;;  %v2033_v17 = vsel %vm50_vm6, 1.0, %v1950_v16  ;;  %v1855_v36 = vpack.c.bf16 %v325_v35, %v324_v34  ;;  %v1859_v39 = vpack.c.bf16 %v327_v38, %v326_v37  ;;  %v1564_v41 = vld [vmem:[%s2285_s4 + $0x100] ss:$0 sm:$0xff]  ;;  %v1570_v51 = vld [vmem:[%s2284_s1 + $0x2] ss:$0 sm:$0xff] }
   0x6   :  { %vm43_vm3 = vcmp.eq.s32.totalorder %v2014_v11, %v1551_v1  ;;  %1846 = vmatpush3.bf16.msra.mxu1 %v1843_v8  ;;  %vm33_vm5 = vcmp.eq.s32.totalorder %v2014_v11, %v1548_v2  ;;  %vm51_vm7 = vcmp.eq.s32.totalorder %v2014_v11, %v49_v15  ;;  %vm504_vm9 = vcmp.eq.s32.totalorder %v1997_v4, %v1570_v51  ;;  %v1576_v52 = vld [vmem:[%s2287_s3] ss:$0 sm:$0xff]  ;;  %v1573_v53 = vld [vmem:[%s2287_s3 + $0x1] ss:$0 sm:$0xff]  ;;  %v1569_v7 = vld [vmem:[%s2285_s4 + $0x108] ss:$0 sm:$0xff] }
   0x7   :  { %vm1839_vm4 = vmpackc.low %vm43_vm3, %vm42_vm1  ;;  %1848 = vmatprep.subr.bf16.mxu1 %v1847_v9  ;;  %v2036_v19 = vsel %vm51_vm7, 1.0, %v1950_v16  ;;  %v1571_v54 = vsel %vm504_vm9, 1.0, %v1950_v16  ;;  %vm601_vm10 = vcmp.eq.s32.totalorder %v1997_v4, %v1576_v52  ;;  %vm602_vm11 = vcmp.eq.s32.totalorder %v2014_v11, %v1576_v52  ;;  %v692_v15 = vld [vmem:[%s2285_s4 + $0x40] sm:$0xff] }
   0x8   :  { %1840 = vmatprep.subr.msk.bf16.mxu0 %vm1839_vm4, %v1949_v13  ;;  %vm591_vm12 = vcmp.eq.s32.totalorder %v1997_v4, %v1573_v53  ;;  %507 = vadd.xlane.f32.xlu1 %v1571_v54  ;;  %vm1870_vm13 = vmpackc.low %vm602_vm11, %vm601_vm10  ;;  %vm592_vm14 = vcmp.eq.s32.totalorder %v2014_v11, %v1573_v53 }
   0x9   :  { %1842 = vmatpush3.bf16.xpose.msk.msra.mxu0 %vm1839_vm4, %v1949_v13 }
   0xa   :  { %1850 = vmatpush3.bf16.msra.mxu1 %v1847_v9 }
   0xd   :  { %1700 = vmatmul.mubr.msk.f32.vlgmr.msra.gmra.mrb[0].mxu1 %vm146_vm0, %v141_v14 }
  0x10   :  { %1689 = vmatmul.mubr.msk.f32.vlgmr.msra.gmra.mrb[0].mxu0 %vm33_vm5, %v1948_v12 }
  0x95   :  { %v508_v3 = vpop.xlane.xlu1 %507 }
  0x96   :  { %v509_v5 = vmax.f32 %v508_v3, 1.0  ;;  %v1140_v3 = vld [vmem:[%s2285_s4 + $0xb0] sm:$0xff] }
  0xe0   :  { %v1701_v25 = vpop.f32.mrb[0].mxu1 }
  0xe1   :  { %v219_v26 = vpop.f32.mrb[1].mxu1 }
  0xe3   :  { %v1690_v18 = vpop.f32.mrb[0].mxu0 }
  0xe4   :  { %v122_v20 = vpop.f32.mrb[1].mxu0  ;;  %v2040_v22 = vadd.f32 %v1690_v18, %v2036_v19 }
  0xe5   :  { %v123_v21 = vadd.f32 %v2033_v17, %v122_v20 }
  0xe6   :  { %v135_v24 = vsel %vm131_vm8, %v2040_v22, 0.0 }
  0xe7   :  { %1706 = vmatprep.mubr.msk.f32.mxu1 %vm131_vm8, %v123_v21  ;;  %1724 = vmatprep.mubr.msk.f32.mxu0 %vm131_vm8, %v123_v21  ;;  %v132_v23 = vsel %vm131_vm8, %v123_v21, 0.0 }
  0xe8   :  { %133 = vadd.xlane.f32.xlu0 %v132_v23  ;;  %v694_v23 = vld [vmem:[%s2285_s4 + $0x50] sm:$0xff] }
  0xec   :  { %136 = vadd.xlane.f32.xlu0 %v135_v24  ;;  %v695_v24 = vld [vmem:[%s2285_s4 + $0x58] sm:$0xff] }
 0x175   :  { %v134_v27 = vpop.xlane.xlu0 %133 }
 0x176   :  { %1936 = vrsqrt.f32 %v134_v27  ;;  %v690_v27 = vld [vmem:[%s2288_s2] sm:$0xff] }
 0x179   :  { %v137_v28 = vpop.xlane.xlu0 %136 }
 0x17a   :  { %1938 = vrsqrt.f32 %v137_v28  ;;  %v691_v28 = vld [vmem:[%s2288_s2 + $0x8] sm:$0xff] }
 0x17b   :  { %1940 = vrcp.f32 %v509_v5 }
 0x180   :  { %v2047_v29 = vpop.eup %1936 }
 0x181   :  { %v228_v32 = vmul.f32 %v2047_v29, %v219_v26  ;;  %v1878_v26 = vpack.c.bf16 %v695_v24, %v694_v23  ;;  %v1135_v23 = vld [vmem:[%s2285_s4 + $0x88] sm:$0xff] }
 0x184   :  { %v2049_v30 = vpop.eup %1938 }
 0x185   :  { %v229_v31 = vmul.f32 %v2049_v30, %v1701_v25 }
 0x187   :  { %v1851_v33 = vpack.c.bf16 %v229_v31, %v228_v32 }
 0x189   :  { %1852 = vmatprep.subr.bf16.mxu1 %v1851_v33 }
 0x18a   :  { %1854 = vmatpush3.bf16.msra.mxu1 %v1851_v33 }
 0x18b   :  { %1856 = vmatprep.subr.bf16.mxu1 %v1855_v36 }
 0x18d   :  { %1707 = vmatmul.mubr.msk.f32.vlgmr.msra.gmra.mrb[2].mxu1 %vm131_vm8, %v2040_v22 }
 0x18e   :  { %1858 = vmatpush3.bf16.msra.mxu1 %v1855_v36 }
 0x18f   :  { %1860 = vmatprep.subr.bf16.mxu1 %v1859_v39 }
 0x192   :  { %1862 = vmatpush3.bf16.msra.mxu1 %v1859_v39 }
 0x193   :  { %1871 = vmatprep.subr.msk.bf16.mxu1 %vm1870_vm13, %v1949_v13 }
 0x260   :  { %v1708_v40 = vpop.f32.mrb[2].mxu1 }
 0x261   :  { %v312_v42 = vmul.f32 %v2049_v30, %v1708_v40  ;;  %v302_v43 = vpop.f32.mrb[3].mxu1  ;;  %v873_v40 = vld [vmem:[%s2285_s4 + $0x60] sm:$0xff] }
 0x262   :  { %v311_v44 = vmul.f32 %v2047_v29, %v302_v43  ;;  %v875_v43 = vld [vmem:[%s2285_s4 + $0x70] sm:$0xff] }
 0x263   :  { %v319_v45 = vadd.f32 %v1564_v41, %v312_v42 }
 0x264   :  { %v318_v46 = vadd.f32 %v1564_v41, %v311_v44  ;;  %v874_v41 = vld [vmem:[%s2285_s4 + $0x68] sm:$0xff]  ;;  %v876_v44 = vld [vmem:[%s2285_s4 + $0x78] sm:$0xff] }
 0x265   :  { %v321_v47 = vadd.f32 %v319_v45, %v141_v14  ;;  %v1886_v42 = vpack.c.bf16 %v874_v41, %v873_v40  ;;  %v1890_v45 = vpack.c.bf16 %v876_v44, %v875_v43  ;;  %v1378_v40 = vld [vmem:[%s2285_s4 + $0xe0] sm:$0xff]  ;;  %v1379_v41 = vld [vmem:[%s2285_s4 + $0xe8] sm:$0xff] }
 0x266   :  { %v320_v48 = vadd.f32 %v318_v46, %v2011_v10  ;;  %v1598_v44 = vld [vmem:[%s2285_s4 + $0x120] ss:$0 sm:$0xff] }
 0x267   :  { %v323_v50 = vmax.f32 %v321_v47, 0.0  ;;  %v1587_v47 = vld [vmem:[%s2285_s4 + $0x110] ss:$0 sm:$0xff] }
 0x268   :  { %v322_v49 = vmax.f32 %v320_v48, 0.0 }
 0x26a   :  { %1717 = vmatprep.mubr.msk.f32.mxu1 %vm146_vm0, %v322_v49 }
 0x26b   :  { %1718 = vmatmul.mubr.msk.f32.vlgmr.msra.gmra.mrb[4].mxu1 %vm146_vm0, %v323_v50 }
 0x26c   :  { %1738 = vmatprep.mubr.msk.f32.mxu1 %vm591_vm12, %v1948_v12  ;;  %1873 = vmatpush3.bf16.xpose.msk.msra.mxu1 %vm1870_vm13, %v1949_v13 }
 0x273   :  { %1739 = vmatmul.mubr.msk.f32.vlgmr.msra.gmra.mrb[6].mxu1 %vm592_vm14, %v1948_v12 }
 0x33e   :  { %v1719_v55 = vpop.f32.mrb[4].mxu1 }
 0x33f   :  { %v410_v56 = vmul.f32 %v2049_v30, %v1719_v55  ;;  %v400_v57 = vpop.f32.mrb[5].mxu1 }
 0x340   :  { %v409_v58 = vmul.f32 %v2047_v29, %v400_v57  ;;  %v1593_v57 = vld [vmem:[%s2287_s3 + $0x2] ss:$0 sm:$0xff] }
 0x341   :  { %vm1053_vm1 = vcmp.eq.s32.totalorder %v1997_v4, %v1593_v57  ;;  %v1138_v4 = vld [vmem:[%s2285_s4 + $0xa0] sm:$0xff] }
 0x342   :  { %v1863_v59 = vpack.c.bf16 %v410_v56, %v409_v58  ;;  %v1594_v58 = vsel %vm1053_vm1, 1.0, %v1950_v16 }
 0x344   :  { %1864 = vmatprep.subr.bf16.mxu0 %v1863_v59 }
 0x345   :  { %1866 = vmatpush3.bf16.msra.mxu0 %v1863_v59 }
 0x346   :  { %1867 = vmatprep.subr.bf16.mxu0 %v1951_v60  ;;  %v1740_v61 = vpop.f32.mrb[6].mxu1 }
 0x347   :  { %v2102_v62 = vadd.f32 %v1740_v61, %v2036_v19  ;;  %v673_v63 = vpop.f32.mrb[7].mxu1  ;;  %v1941_v19 = vpop.eup %1940 }
 0x348   :  { %1725 = vmatmul.mubr.msk.f32.vlgmr.msra.gmra.mrb[2].mxu0 %vm131_vm8, %v2040_v22  ;;  %v674_v0 = vadd.f32 %v2033_v17, %v673_v63  ;;  %v693_v17 = vld [vmem:[%s2285_s4 + $0x48] sm:$0xff]  ;;  %v511_v25 = vmul.f32 %v1941_v19, %v1571_v54 }
 0x349   :  { %1731 = vmatprep.mubr.msk.f32.mxu0 %vm1952_vm15, %v1950_v16  ;;  %v685_v1 = vsel %vm131_vm8, %v2102_v62, 0.0  ;;  %v1874_v21 = vpack.c.bf16 %v693_v17, %v692_v15 }
 0x34a   :  { %1756 = vmatprep.mubr.msk.f32.mxu1 %vm131_vm8, %v674_v0  ;;  %686 = vadd.xlane.f32.xlu0 %v685_v1  ;;  %v682_v2 = vsel %vm131_vm8, %v674_v0, 0.0 }
 0x34b   :  { %683 = vadd.xlane.f32.xlu1 %v682_v2  ;;  %v1139_v2 = vld [vmem:[%s2285_s4 + $0xa8] sm:$0xff] }
 0x34c   :  { %v1902_v5 = vpack.c.bf16 %v1139_v2, %v1138_v4 }
 0x34f   :  { %1056 = vadd.xlane.f32.xlu1 %v1594_v58 }
 0x41b   :  { %v1726_v6 = vpop.f32.mrb[2].mxu0 }
 0x41c   :  { %v487_v8 = vmul.f32 %v2049_v30, %v1726_v6  ;;  %v477_v9 = vpop.f32.mrb[3].mxu0  ;;  %v684_v30 = vpop.xlane.xlu1 %683 }
 0x41d   :  { %v486_v10 = vmul.f32 %v2047_v29, %v477_v9  ;;  %v687_v29 = vpop.xlane.xlu0 %686 }
 0x41e   :  { %v494_v11 = vadd.f32 %v1569_v7, %v487_v8  ;;  %1942 = vrsqrt.f32 %v687_v29 }
 0x41f   :  { %v493_v12 = vadd.f32 %v1569_v7, %v486_v10  ;;  %1944 = vrsqrt.f32 %v684_v30  ;;  %v1592_v10 = vld [vmem:[%s2285_s4 + $0x118] ss:$0 sm:$0xff] }
 0x420   :  { %v496_v13 = vadd.f32 %v494_v11, %v323_v50  ;;  %v1057_v7 = vpop.xlane.xlu1 %1056 }
 0x421   :  { %v495_v14 = vadd.f32 %v493_v12, %v322_v49  ;;  %v1058_v8 = vmax.f32 %v1057_v7, 1.0 }
 0x422   :  { %v498_v18 = vmax.f32 %v496_v13, 0.0 }
 0x423   :  { %v497_v20 = vmax.f32 %v495_v14, 0.0  ;;  %1946 = vrcp.f32 %v1058_v8 }
 0x425   :  { %v1868_v22 = vpack.c.bf16 %v498_v18, %v497_v20 }
 0x427   :  { %1869 = vmatpush3.bf16.msra.mxu0 %v1868_v22  ;;  %v1134_v22 = vld [vmem:[%s2285_s4 + $0x80] sm:$0xff] }
 0x428   :  { %1875 = vmatprep.subr.bf16.mxu0 %v1874_v21  ;;  %v2137_v33 = vpop.eup %1942 }
 0x429   :  { %v2139_v34 = vpop.eup %1944 }
 0x42a   :  { %1732 = vmatmul.mubr.msk.f32.vlgmr.msra.gmra.mrb[4].mxu0 %vm131_vm8, %v511_v25 }
 0x42b   :  { %1877 = vmatpush3.bf16.msra.mxu0 %v1874_v21  ;;  %1749 = vmatprep.mubr.msk.f32.mxu0 %vm146_vm0, %v690_v27 }
 0x42c   :  { %1879 = vmatprep.subr.bf16.mxu0 %v1878_v26 }
 0x42d   :  { %v1947_v20 = vpop.eup %1946 }
 0x42e   :  { %v1060_v25 = vmul.f32 %v1947_v20, %v1594_v58 }
 0x42f   :  { %1881 = vmatpush3.bf16.msra.mxu0 %v1878_v26  ;;  %v1908_v26 = vpack.c.bf16 %v1135_v23, %v1134_v22 }
 0x430   :  { %1887 = vmatprep.subr.bf16.mxu0 %v1886_v42 }
 0x432   :  { %1750 = vmatmul.mubr.msk.f32.vlgmr.msra.gmra.mrb[6].mxu0 %vm146_vm0, %v691_v28 }
 0x433   :  { %1889 = vmatpush3.bf16.msra.mxu0 %v1886_v42  ;;  %v1920_v42 = vpack.c.bf16 %v1379_v41, %v1378_v40 }
 0x434   :  { %1891 = vmatprep.subr.bf16.mxu0 %v1890_v45 }
 0x437   :  { %1893 = vmatpush3.bf16.msra.mxu0 %v1890_v45 }
 0x438   :  { %1901 = vmatprep.subr.bf16.mxu0 %v1951_v60 }
 0x4fd   :  { %v2135_v31 = vpop.f32.mrb[4].mxu0 }
 0x4fe   :  { %v1733_v32 = vpop.f32.mrb[5].mxu0 }
 0x505   :  { %v1751_v35 = vpop.f32.mrb[6].mxu0 }
 0x506   :  { %v778_v36 = vmul.f32 %v2137_v33, %v1751_v35  ;;  %v768_v37 = vpop.f32.mrb[7].mxu0  ;;  %v1295_v35 = vld [vmem:[%s2285_s4 + $0xc0] sm:$0xff] }
 0x507   :  { %v777_v38 = vmul.f32 %v2139_v34, %v768_v37  ;;  %v1297_v37 = vld [vmem:[%s2285_s4 + $0xd0] sm:$0xff] }
 0x509   :  { %v1882_v39 = vpack.c.bf16 %v778_v36, %v777_v38  ;;  %v1298_v38 = vld [vmem:[%s2285_s4 + $0xd8] sm:$0xff] }
 0x50b   :  { %1883 = vmatprep.subr.bf16.mxu1 %v1882_v39 }
 0x50c   :  { %1885 = vmatpush3.bf16.msra.mxu1 %v1882_v39  ;;  %v1917_v39 = vpack.c.bf16 %v1298_v38, %v1297_v37 }
 0x50f   :  { %1757 = vmatmul.mubr.msk.f32.vlgmr.msra.gmra.mrb[8].mxu1 %vm131_vm8, %v2102_v62 }
 0x510   :  { %1774 = vmatprep.mubr.msk.f32.mxu1 %vm131_vm8, %v674_v0 }
 0x5e2   :  { %v1758_v46 = vpop.f32.mrb[8].mxu1 }
 0x5e3   :  { %v861_v48 = vmul.f32 %v2137_v33, %v1758_v46  ;;  %v851_v49 = vpop.f32.mrb[9].mxu1 }
 0x5e4   :  { %v860_v50 = vmul.f32 %v2139_v34, %v851_v49  ;;  %v1380_v49 = vld [vmem:[%s2285_s4 + $0xf0] sm:$0xff] }
 0x5e5   :  { %v868_v51 = vadd.f32 %v1587_v47, %v861_v48 }
 0x5e6   :  { %v867_v52 = vadd.f32 %v1587_v47, %v860_v50  ;;  %v1381_v50 = vld [vmem:[%s2285_s4 + $0xf8] sm:$0xff] }
 0x5e7   :  { %v870_v53 = vadd.f32 %v868_v51, %v691_v28  ;;  %v1137_v28 = vld [vmem:[%s2285_s4 + $0x98] sm:$0xff]  ;;  %v1923_v51 = vpack.c.bf16 %v1381_v50, %v1380_v49 }
 0x5e8   :  { %v869_v54 = vadd.f32 %v867_v52, %v690_v27  ;;  %v1136_v27 = vld [vmem:[%s2285_s4 + $0x90] sm:$0xff]  ;;  %v1461_v52 = vld [vmem:[%s2289_s5] sm:$0xff] }
 0x5e9   :  { %v872_v56 = vmax.f32 %v870_v53, 0.0  ;;  %v1911_v29 = vpack.c.bf16 %v1137_v28, %v1136_v27  ;;  %v1462_v53 = vld [vmem:[%s2289_s5 + $0x8] sm:$0xff] }
 0x5ea   :  { %v871_v55 = vmax.f32 %v869_v54, 0.0  ;;  %v1926_v54 = vpack.c.bf16 %v1462_v53, %v1461_v52 }
 0x5ec   :  { %1767 = vmatprep.mubr.msk.f32.mxu0 %vm146_vm0, %v871_v55 }
 0x5ed   :  { %1768 = vmatmul.mubr.msk.f32.vlgmr.msra.gmra.mrb[8].mxu0 %vm146_vm0, %v872_v56 }
 0x5ee   :  { %1792 = vmatprep.mubr.msk.f32.mxu0 %vm1952_vm15, %v1950_v16  ;;  %1903 = vmatpush3.bf16.msra.mxu0 %v1902_v5 }
 0x5ef   :  { %1904 = vmatprep.subr.bf16.mxu0 %v1951_v60 }
 0x6c0   :  { %v1769_v59 = vpop.f32.mrb[8].mxu0 }
 0x6c1   :  { %v959_v61 = vmul.f32 %v2137_v33, %v1769_v59  ;;  %v949_v63 = vpop.f32.mrb[9].mxu0  ;;  %v1463_v59 = vld [vmem:[%s2289_s5 + $0x10] sm:$0xff] }
 0x6c2   :  { %v958_v0 = vmul.f32 %v2139_v34, %v949_v63 }
 0x6c4   :  { %v1894_v1 = vpack.c.bf16 %v959_v61, %v958_v0  ;;  %v1464_v61 = vld [vmem:[%s2289_s5 + $0x18] sm:$0xff] }
 0x6c5   :  { %v1929_v63 = vpack.c.bf16 %v1464_v61, %v1463_v59 }
 0x6c6   :  { %1895 = vmatprep.subr.bf16.mxu1 %v1894_v1 }
 0x6c7   :  { %1897 = vmatpush3.bf16.msra.mxu1 %v1894_v1 }
 0x6c8   :  { %1898 = vmatprep.subr.bf16.mxu1 %v1951_v60 }
 0x6ca   :  { %1775 = vmatmul.mubr.msk.f32.vlgmr.msra.gmra.mrb[10].mxu1 %vm131_vm8, %v2102_v62  ;;  %v1141_v62 = vld [vmem:[%s2285_s4 + $0xb8] sm:$0xff] }
 0x6cb   :  { %1781 = vmatprep.mubr.msk.f32.mxu1 %vm1952_vm15, %v1950_v16  ;;  %v1905_v6 = vpack.c.bf16 %v1141_v62, %v1140_v3  ;;  %v1603_v3 = vld [vmem:[%s2289_s5 + $0x20] ss:$0 sm:$0xff] }
 0x6cd   :  { %1906 = vmatpush3.bf16.msra.mxu0 %v1905_v6 }
 0x6ce   :  { %1913 = vmatprep.subr.bf16.mxu0 %v1951_v60 }
 0x79d   :  { %v1776_v9 = vpop.f32.mrb[10].mxu1 }
 0x79e   :  { %v1036_v11 = vmul.f32 %v2137_v33, %v1776_v9  ;;  %v1026_v12 = vpop.f32.mrb[11].mxu1 }
 0x79f   :  { %v1035_v13 = vmul.f32 %v2139_v34, %v1026_v12 }
 0x7a0   :  { %v1043_v14 = vadd.f32 %v1592_v10, %v1036_v11 }
 0x7a1   :  { %v1042_v15 = vadd.f32 %v1592_v10, %v1035_v13 }
 0x7a2   :  { %v1045_v17 = vadd.f32 %v1043_v14, %v872_v56 }
 0x7a3   :  { %v1044_v18 = vadd.f32 %v1042_v15, %v871_v55 }
 0x7a4   :  { %v1047_v19 = vmax.f32 %v1045_v17, 0.0 }
 0x7a5   :  { %v1046_v21 = vmax.f32 %v1044_v18, 0.0 }
 0x7a7   :  { %v1899_v24 = vpack.c.bf16 %v1047_v19, %v1046_v21 }
 0x7a9   :  { %1900 = vmatpush3.bf16.msra.mxu1 %v1899_v24 }
 0x7aa   :  { %1907 = vmatprep.subr.bf16.mxu1 %v1951_v60 }
 0x7ac   :  { %1782 = vmatmul.mubr.msk.f32.vlgmr.msra.gmra.mrb[12].mxu1 %vm131_vm8, %v1060_v25 }
 0x7ad   :  { %1909 = vmatpush3.bf16.msra.mxu1 %v1908_v26  ;;  %1803 = vmatprep.mubr.msk.f32.mxu1 %vm1952_vm15, %v1950_v16 }
 0x7ae   :  { %1910 = vmatprep.subr.bf16.mxu1 %v1951_v60 }
 0x7b1   :  { %1912 = vmatpush3.bf16.msra.mxu1 %v1911_v29 }
 0x7b2   :  { %1919 = vmatprep.subr.bf16.mxu1 %v1951_v60 }
 0x7b4   :  { %1804 = vmatmul.mubr.msk.f32.vlgmr.msra.gmra.mrb[14].mxu1 %vm146_vm0, %v2135_v31  ;;  %v1296_v31 = vld [vmem:[%s2285_s4 + $0xc8] sm:$0xff] }
 0x7b5   :  { %1825 = vmatprep.mubr.msk.f32.mxu1 %vm1952_vm15, %v1950_v16  ;;  %v1914_v36 = vpack.c.bf16 %v1296_v31, %v1295_v35  ;;  %1921 = vmatpush3.bf16.msra.mxu1 %v1920_v42 }
 0x7b6   :  { %1922 = vmatprep.subr.bf16.mxu1 %v1951_v60 }
 0x7b9   :  { %1924 = vmatpush3.bf16.msra.mxu1 %v1923_v51 }
 0x87f   :  { %v1130_v30 = vpop.f32.mrb[12].mxu1 }
 0x880   :  { %v1783_v32 = vpop.f32.mrb[13].mxu1  ;;  %1793 = vmatmul.mubr.msk.f32.vlgmr.msra.gmra.mrb[10].mxu0 %vm146_vm0, %v1130_v30 }
 0x881   :  { %1814 = vmatprep.mubr.msk.f32.mxu0 %vm1952_vm15, %v1950_v16  ;;  %1915 = vmatpush3.bf16.msra.mxu0 %v1914_v36 }
 0x882   :  { %1916 = vmatprep.subr.bf16.mxu0 %v1951_v60 }
 0x885   :  { %1918 = vmatpush3.bf16.msra.mxu0 %v1917_v39 }
 0x886   :  { %1925 = vmatprep.subr.bf16.mxu0 %v1951_v60 }
 0x887   :  { %v1284_v33 = vpop.f32.mrb[14].mxu1 }
 0x888   :  { %v1805_v34 = vpop.f32.mrb[15].mxu1 }
 0x953   :  { %v1211_v43 = vpop.f32.mrb[10].mxu0 }
 0x954   :  { %v1285_v45 = vadd.f32 %v1284_v33, %v1211_v43  ;;  %v1794_v46 = vpop.f32.mrb[11].mxu0 }
 0x956   :  { %v1293_v47 = vadd.f32 %v1598_v44, %v1285_v45 }
 0x958   :  { %v1294_v48 = vmax.f32 %v1293_v47, 0.0 }
 0x95a   :  { %1815 = vmatmul.mubr.msk.f32.vlgmr.msra.gmra.mrb[12].mxu0 %vm146_vm0, %v1294_v48 }
 0x95b   :  { %1836 = vmatprep.mubr.msk.f32.mxu0 %vm1952_vm15, %v1950_v16  ;;  %1927 = vmatpush3.bf16.msra.mxu0 %v1926_v54  ;;  %v1599_v16 = vld [vmem:[%s2285_s4 + $0x128] ss:$0 sm:$0xff] }
 0x95c   :  { %1928 = vmatprep.subr.bf16.mxu0 %v1951_v60  ;;  %v1601_v60 = vld [vmem:[%s2285_s4 + $0x130] ss:$0 sm:$0xff] }
 0x95f   :  { %1930 = vmatpush3.bf16.msra.mxu0 %v1929_v63 }
 0xa2d   :  { %v1373_v55 = vpop.f32.mrb[12].mxu0 }
 0xa2e   :  { %v1374_v56 = vadd.f32 %v1599_v16, %v1373_v55  ;;  %v1816_v57 = vpop.f32.mrb[13].mxu0 }
 0xa30   :  { %v1377_v58 = vmax.f32 %v1374_v56, 0.0 }
 0xa32   :  { %1826 = vmatmul.mubr.msk.f32.vlgmr.msra.gmra.mrb[16].mxu1 %vm146_vm0, %v1377_v58 }
 0xb05   :  { %v1456_v0 = vpop.f32.mrb[16].mxu1 }
 0xb06   :  { %v1457_v1 = vadd.f32 %v1601_v60, %v1456_v0  ;;  %v1827_v4 = vpop.f32.mrb[17].mxu1 }
 0xb08   :  { %v1460_v2 = vmax.f32 %v1457_v1, 0.0 }
 0xb0a   :  { %1837 = vmatmul.mubr.msk.f32.vlgmr.msra.gmra.mrb[14].mxu0 %vm146_vm0, %v1460_v2 }
 0xbdd   :  { %v1539_v5 = vpop.f32.mrb[14].mxu0 }
 0xbde   :  { %v1540_v62 = vadd.f32 %v1603_v3, %v1539_v5  ;;  %v1838_v6 = vpop.f32.mrb[15].mxu0 }
 0xbe0   :  { %1543 = vst [vmem:[%s2290_s6] sm:$0xff] %v1540_v62 }

</bundles_post_ra>
